<compile_context>
chip_gen: v5e
topology: v5e:2x2
jax: 0.10.0
libtpu: 0.0.40
codegen_flags: <defaults>
</compile_context>

<pallas_src>
import jax
import jax.numpy as jnp
from jax.experimental import pallas as pl
from jax.experimental.pallas import tpu as pltpu

IN_DIM = 256        # in_dim of the autoencoder (multiple of 128 -> lane-dense)
N_LAT = 64          # bottleneck size (default n=64 in the module)
LANE = 128          # lane-dense padding target for hidden widths
OUT_DTYPE = jnp.bfloat16   # kernel output dtype (bf16 halves output HBM traffic)

BATCH = 8           # small demo batch (single tile, 1 stream)
BATCH_RAGGED = 40   # second demo batch (2 grid steps, ragged tail, 2 streams)

# PyTorch layer shapes (in_features, out_features) of the 6 Linear layers.
LAYER_DIMS = [(IN_DIM, 128), (128, 64), (64, N_LAT),
              (N_LAT, 64), (64, 128), (128, IN_DIM)]


def _round_up(v, m):
    return ((v + m - 1) // m) * m


def _choose_tb(batch):
    """Batch tile: big (<=512) for throughput, >=2 grid steps when possible."""
    if batch >= 1024:
        return 512
    if batch > 32:
        # split into at least two grid steps (v7x megacore), 16-row aligned
        return _round_up(-(-batch // 2), 16)
    # tiny batch: single step, minimal sublane-aligned tile
    return _round_up(max(batch, 1), 8)


# ----------------------------------------------------------------------------
# Kernel: full encoder + decoder on one (TB, IN_DIM) batch tile.
# Weights arrive pre-transposed (in, out), zero-padded to lane-dense widths and
# cast to bf16; biases are f32 (1, out_padded). All dots accumulate in f32.
# The tile is processed as 1 or 2 independent row streams (static unroll) so the
# MXU keeps streaming while the other stream runs its VPU/EUP epilogue.
# ----------------------------------------------------------------------------
def autoencoder_kernel(x_ref,
                       w1, b1, w2, b2, w3, b3,
                       w4, b4, w5, b5, w6, b6,
                       o_ref):
    relu = lambda v: jnp.maximum(v, 0.0)
    layers = ((w1, b1, relu), (w2, b2, relu), (w3, b3, relu),
              (w4, b4, relu), (w5, b5, relu), (w6, b6, jnp.tanh))

    def dense(h, w_ref, b_ref, act):
        y = jnp.dot(h.astype(jnp.bfloat16), w_ref[...],
                    preferred_element_type=jnp.float32)
        return act(y + b_ref[...])

    tb = x_ref.shape[0]
    n_streams = 2 if tb % 32 == 0 else 1   # each stream a multiple of 16 rows
    sub = tb // n_streams

    hs = [x_ref[pl.ds(s * sub, sub), :] for s in range(n_streams)]
    for (w_ref, b_ref, act) in layers:          # static unroll: 6 layers
        hs = [dense(h, w_ref, b_ref, act) for h in hs]
    for s in range(n_streams):
        o_ref[pl.ds(s * sub, sub), :] = hs[s].astype(o_ref.dtype)


# ----------------------------------------------------------------------------
# Param preparation (call ONCE at init, outside the jitted forward)
# ----------------------------------------------------------------------------
def prepare_params(params):
    """Zero-pad all layer dims to multiples of 128; weights -> bf16, biases f32."""
    out = []
    for (w, b) in params:
        fi, fo = w.shape
        fip, fop = _round_up(fi, LANE), _round_up(fo, LANE)
        w_p = jnp.zeros((fip, fop), jnp.float32).at[:fi, :fo].set(w)
        b_p = jnp.zeros((1, fop), jnp.float32).at[:, :fo].set(b)
        out.append((w_p.astype(jnp.bfloat16), b_p))
    return out


# ----------------------------------------------------------------------------
# Forward wrapper
# ----------------------------------------------------------------------------
@jax.jit
def autoencoder_forward(x, prepared_params):
    B, D = x.shape
    assert D == IN_DIM and IN_DIM % LANE == 0

    TB = _choose_tb(B)
    grid = (pl.cdiv(B, TB),)   # ragged tail handled by Pallas partial-block masking

    x_spec = pl.BlockSpec((TB, IN_DIM), lambda i: (i, 0))
    out_spec = pl.BlockSpec((TB, IN_DIM), lambda i: (i, 0))

    param_specs, flat_params = [], []
    for (w, b) in prepared_params:
        fi, fo = w.shape
        param_specs.append(pl.BlockSpec((fi, fo), lambda i: (0, 0)))
        param_specs.append(pl.BlockSpec((1, fo), lambda i: (0, 0)))
        flat_params.extend([w, b])

    return pl.pallas_call(
        autoencoder_kernel,
        out_shape=jax.ShapeDtypeStruct((B, IN_DIM), OUT_DTYPE),
        grid=grid,
        in_specs=[x_spec] + param_specs,
        out_specs=out_spec,
        compiler_params=pltpu.CompilerParams(
            dimension_semantics=("parallel",)),
    )(x, *flat_params)


# ----------------------------------------------------------------------------
# Params + references
# ----------------------------------------------------------------------------
def init_params(key):
    """Deterministic init matching AutoencoderNN layer shapes.

    PyTorch stores Linear weights as (out, in); here we directly build the
    transposed (in, out) layout the kernel consumes. Values are synthetic
    (uniform, PyTorch-Linear-style bound), not a checkpoint load.
    """
    params = []
    for (fi, fo) in LAYER_DIMS:
        key, kw, kb = jax.random.split(key, 3)
        bound = 1.0 / jnp.sqrt(fi)
        w = jax.random.uniform(kw, (fi, fo), jnp.float32, -bound, bound)
        b = jax.random.uniform(kb, (1, fo), jnp.float32, -bound, bound)
        params.append((w, b))
    return params


def reference_forward_f32(x, params):
    h = x
    for idx, (w, b) in enumerate(params):
        h = h @ w + b
        h = jnp.tanh(h) if idx == len(params) - 1 else jnp.maximum(h, 0.0)
    return h


def reference_forward_bf16(x, params):
    """Same bf16-operand / f32-accumulate recipe as the kernel (tight check)."""
    h = x
    for idx, (w, b) in enumerate(params):
        y = jnp.dot(h.astype(jnp.bfloat16), w.astype(jnp.bfloat16),
                    preferred_element_type=jnp.float32) + b
        h = jnp.tanh(y) if idx == len(params) - 1 else jnp.maximum(y, 0.0)
    return h


def _check(batch, params, prepared, key):
    x = jax.random.normal(key, (batch, IN_DIM), jnp.float32)
    out = jax.block_until_ready(autoencoder_forward(x, prepared))
    assert out.shape == (batch, IN_DIM)
    out_f32 = out.astype(jnp.float32)
    ref_bf16 = reference_forward_bf16(x, params)
    ref_f32 = reference_forward_f32(x, params)
    # Tight check vs. identically-quantized (bf16 operand, f32 accum) reference;
    # kernel differs only by f32 summation order + the final bf16 output cast.
    assert jnp.allclose(out_f32, ref_bf16, atol=1.5e-2, rtol=1.5e-2)
    # Loose sanity check vs. the full-f32 PyTorch-equivalent forward
    # (bf16 MXU operands + bf16 output are an intentional precision tradeoff).
    assert jnp.allclose(out_f32, ref_f32, atol=7.5e-2, rtol=7.5e-2)


if __name__ == "__main__":
    key = jax.random.PRNGKey(0)
    kx1, kx2, kp = jax.random.split(key, 3)
    params = init_params(kp)
    prepared = prepare_params(params)   # one-time pad + bf16 cast (not per call)

    _check(BATCH, params, prepared, kx1)          # single-tile, 1-stream path
    _check(BATCH_RAGGED, params, prepared, kx2)   # 2 grid steps, ragged tail, 2 streams

    print("KERNEL_OK")
</pallas_src>

<mosaic_0001>
module attributes {stable_mosaic.version = 11 : i64} {
  func.func @autoencoder_kernel(%arg0: i32, %arg1: memref<8x256xf32, #tpu.memory_space<vmem>>, %arg2: memref<256x128xbf16, #tpu.memory_space<vmem>>, %arg3: memref<1x128xf32, #tpu.memory_space<vmem>>, %arg4: memref<128x128xbf16, #tpu.memory_space<vmem>>, %arg5: memref<1x128xf32, #tpu.memory_space<vmem>>, %arg6: memref<128x128xbf16, #tpu.memory_space<vmem>>, %arg7: memref<1x128xf32, #tpu.memory_space<vmem>>, %arg8: memref<128x128xbf16, #tpu.memory_space<vmem>>, %arg9: memref<1x128xf32, #tpu.memory_space<vmem>>, %arg10: memref<128x128xbf16, #tpu.memory_space<vmem>>, %arg11: memref<1x128xf32, #tpu.memory_space<vmem>>, %arg12: memref<128x256xbf16, #tpu.memory_space<vmem>>, %arg13: memref<1x256xf32, #tpu.memory_space<vmem>>, %arg14: memref<8x256xbf16, #tpu.memory_space<vmem>>) attributes {dimension_semantics = [#tpu.dimension_semantics<parallel>], iteration_bounds = array<i64: 1>, scalar_prefetch = 0 : i64, scratch_operands = 0 : i64, tpu.core_type = #tpu.core_type<tc>, window_params = [{transform_indices = @transform_0, window_bounds = array<i64: 8, 256>}, {pipeline_mode = #tpu.pipeline_mode<synchronous>, transform_indices = @transform_1, window_bounds = array<i64: 256, 128>}, {pipeline_mode = #tpu.pipeline_mode<synchronous>, transform_indices = @transform_2, window_bounds = array<i64: 1, 128>}, {pipeline_mode = #tpu.pipeline_mode<synchronous>, transform_indices = @transform_3, window_bounds = array<i64: 128, 128>}, {pipeline_mode = #tpu.pipeline_mode<synchronous>, transform_indices = @transform_4, window_bounds = array<i64: 1, 128>}, {pipeline_mode = #tpu.pipeline_mode<synchronous>, transform_indices = @transform_5, window_bounds = array<i64: 128, 128>}, {pipeline_mode = #tpu.pipeline_mode<synchronous>, transform_indices = @transform_6, window_bounds = array<i64: 1, 128>}, {pipeline_mode = #tpu.pipeline_mode<synchronous>, transform_indices = @transform_7, window_bounds = array<i64: 128, 128>}, {pipeline_mode = #tpu.pipeline_mode<synchronous>, transform_indices = @transform_8, window_bounds = array<i64: 1, 128>}, {pipeline_mode = #tpu.pipeline_mode<synchronous>, transform_indices = @transform_9, window_bounds = array<i64: 128, 128>}, {pipeline_mode = #tpu.pipeline_mode<synchronous>, transform_indices = @transform_10, window_bounds = array<i64: 1, 128>}, {pipeline_mode = #tpu.pipeline_mode<synchronous>, transform_indices = @transform_11, window_bounds = array<i64: 128, 256>}, {pipeline_mode = #tpu.pipeline_mode<synchronous>, transform_indices = @transform_12, window_bounds = array<i64: 1, 256>}, {transform_indices = @transform_13, window_bounds = array<i64: 8, 256>}]} {
    %c0 = arith.constant 0 : index
    %c0_0 = arith.constant 0 : index
    %0 = vector.load %arg1[%c0, %c0_0] : memref<8x256xf32, #tpu.memory_space<vmem>>, vector<8x256xf32>
    %1 = arith.truncf %0 : vector<8x256xf32> to vector<8x256xbf16>
    %c0_1 = arith.constant 0 : index
    %c0_2 = arith.constant 0 : index
    %2 = vector.load %arg2[%c0_1, %c0_2] : memref<256x128xbf16, #tpu.memory_space<vmem>>, vector<256x128xbf16>
    %cst = arith.constant dense<0.000000e+00> : vector<8x128xf32>
    %3 = tpu.matmul %1, %2, %cst {dimension_numbers = #tpu.dot_dimension_numbers<[1], [0], [0], [1], [0, 0, 1, 1], [], []>} : vector<8x256xbf16>, vector<256x128xbf16>, vector<8x128xf32> -> vector<8x128xf32>
    %c0_3 = arith.constant 0 : index
    %c0_4 = arith.constant 0 : index
    %4 = vector.load %arg3[%c0_3, %c0_4] : memref<1x128xf32, #tpu.memory_space<vmem>>, vector<1x128xf32>
    %5 = vector.broadcast %4 : vector<1x128xf32> to vector<8x128xf32>
    %6 = arith.addf %3, %5 : vector<8x128xf32>
    %cst_5 = arith.constant 0.000000e+00 : f32
    %7 = vector.broadcast %cst_5 : f32 to vector<8x128xf32>
    %8 = arith.maximumf %6, %7 : vector<8x128xf32>
    %9 = arith.truncf %8 : vector<8x128xf32> to vector<8x128xbf16>
    %c0_6 = arith.constant 0 : index
    %c0_7 = arith.constant 0 : index
    %10 = vector.load %arg4[%c0_6, %c0_7] : memref<128x128xbf16, #tpu.memory_space<vmem>>, vector<128x128xbf16>
    %cst_8 = arith.constant dense<0.000000e+00> : vector<8x128xf32>
    %11 = tpu.matmul %9, %10, %cst_8 {dimension_numbers = #tpu.dot_dimension_numbers<[1], [0], [0], [1], [0, 0, 1, 1], [], []>} : vector<8x128xbf16>, vector<128x128xbf16>, vector<8x128xf32> -> vector<8x128xf32>
    %c0_9 = arith.constant 0 : index
    %c0_10 = arith.constant 0 : index
    %12 = vector.load %arg5[%c0_9, %c0_10] : memref<1x128xf32, #tpu.memory_space<vmem>>, vector<1x128xf32>
    %13 = vector.broadcast %12 : vector<1x128xf32> to vector<8x128xf32>
    %14 = arith.addf %11, %13 : vector<8x128xf32>
    %cst_11 = arith.constant 0.000000e+00 : f32
    %15 = vector.broadcast %cst_11 : f32 to vector<8x128xf32>
    %16 = arith.maximumf %14, %15 : vector<8x128xf32>
    %17 = arith.truncf %16 : vector<8x128xf32> to vector<8x128xbf16>
    %c0_12 = arith.constant 0 : index
    %c0_13 = arith.constant 0 : index
    %18 = vector.load %arg6[%c0_12, %c0_13] : memref<128x128xbf16, #tpu.memory_space<vmem>>, vector<128x128xbf16>
    %cst_14 = arith.constant dense<0.000000e+00> : vector<8x128xf32>
    %19 = tpu.matmul %17, %18, %cst_14 {dimension_numbers = #tpu.dot_dimension_numbers<[1], [0], [0], [1], [0, 0, 1, 1], [], []>} : vector<8x128xbf16>, vector<128x128xbf16>, vector<8x128xf32> -> vector<8x128xf32>
    %c0_15 = arith.constant 0 : index
    %c0_16 = arith.constant 0 : index
    %20 = vector.load %arg7[%c0_15, %c0_16] : memref<1x128xf32, #tpu.memory_space<vmem>>, vector<1x128xf32>
    %21 = vector.broadcast %20 : vector<1x128xf32> to vector<8x128xf32>
    %22 = arith.addf %19, %21 : vector<8x128xf32>
    %cst_17 = arith.constant 0.000000e+00 : f32
    %23 = vector.broadcast %cst_17 : f32 to vector<8x128xf32>
    %24 = arith.maximumf %22, %23 : vector<8x128xf32>
    %25 = arith.truncf %24 : vector<8x128xf32> to vector<8x128xbf16>
    %c0_18 = arith.constant 0 : index
    %c0_19 = arith.constant 0 : index
    %26 = vector.load %arg8[%c0_18, %c0_19] : memref<128x128xbf16, #tpu.memory_space<vmem>>, vector<128x128xbf16>
    %cst_20 = arith.constant dense<0.000000e+00> : vector<8x128xf32>
    %27 = tpu.matmul %25, %26, %cst_20 {dimension_numbers = #tpu.dot_dimension_numbers<[1], [0], [0], [1], [0, 0, 1, 1], [], []>} : vector<8x128xbf16>, vector<128x128xbf16>, vector<8x128xf32> -> vector<8x128xf32>
    %c0_21 = arith.constant 0 : index
    %c0_22 = arith.constant 0 : index
    %28 = vector.load %arg9[%c0_21, %c0_22] : memref<1x128xf32, #tpu.memory_space<vmem>>, vector<1x128xf32>
    %29 = vector.broadcast %28 : vector<1x128xf32> to vector<8x128xf32>
    %30 = arith.addf %27, %29 : vector<8x128xf32>
    %cst_23 = arith.constant 0.000000e+00 : f32
    %31 = vector.broadcast %cst_23 : f32 to vector<8x128xf32>
    %32 = arith.maximumf %30, %31 : vector<8x128xf32>
    %33 = arith.truncf %32 : vector<8x128xf32> to vector<8x128xbf16>
    %c0_24 = arith.constant 0 : index
    %c0_25 = arith.constant 0 : index
    %34 = vector.load %arg10[%c0_24, %c0_25] : memref<128x128xbf16, #tpu.memory_space<vmem>>, vector<128x128xbf16>
    %cst_26 = arith.constant dense<0.000000e+00> : vector<8x128xf32>
    %35 = tpu.matmul %33, %34, %cst_26 {dimension_numbers = #tpu.dot_dimension_numbers<[1], [0], [0], [1], [0, 0, 1, 1], [], []>} : vector<8x128xbf16>, vector<128x128xbf16>, vector<8x128xf32> -> vector<8x128xf32>
    %c0_27 = arith.constant 0 : index
    %c0_28 = arith.constant 0 : index
    %36 = vector.load %arg11[%c0_27, %c0_28] : memref<1x128xf32, #tpu.memory_space<vmem>>, vector<1x128xf32>
    %37 = vector.broadcast %36 : vector<1x128xf32> to vector<8x128xf32>
    %38 = arith.addf %35, %37 : vector<8x128xf32>
    %cst_29 = arith.constant 0.000000e+00 : f32
    %39 = vector.broadcast %cst_29 : f32 to vector<8x128xf32>
    %40 = arith.maximumf %38, %39 : vector<8x128xf32>
    %41 = arith.truncf %40 : vector<8x128xf32> to vector<8x128xbf16>
    %c0_30 = arith.constant 0 : index
    %c0_31 = arith.constant 0 : index
    %42 = vector.load %arg12[%c0_30, %c0_31] : memref<128x256xbf16, #tpu.memory_space<vmem>>, vector<128x256xbf16>
    %cst_32 = arith.constant dense<0.000000e+00> : vector<8x256xf32>
    %43 = tpu.matmul %41, %42, %cst_32 {dimension_numbers = #tpu.dot_dimension_numbers<[1], [0], [0], [1], [0, 0, 1, 1], [], []>} : vector<8x128xbf16>, vector<128x256xbf16>, vector<8x256xf32> -> vector<8x256xf32>
    %c0_33 = arith.constant 0 : index
    %c0_34 = arith.constant 0 : index
    %44 = vector.load %arg13[%c0_33, %c0_34] : memref<1x256xf32, #tpu.memory_space<vmem>>, vector<1x256xf32>
    %45 = vector.broadcast %44 : vector<1x256xf32> to vector<8x256xf32>
    %46 = arith.addf %43, %45 : vector<8x256xf32>
    %47 = math.tanh %46 : vector<8x256xf32>
    %48 = arith.truncf %47 : vector<8x256xf32> to vector<8x256xbf16>
    %c0_35 = arith.constant 0 : index
    %c0_36 = arith.constant 0 : index
    %49 = vector.load %arg14[%c0_35, %c0_36] : memref<8x256xbf16, #tpu.memory_space<vmem>>, vector<8x256xbf16>
    tpu.vector_store %arg14[%c0_35, %c0_36], %48 {strides = array<i32>} : memref<8x256xbf16, #tpu.memory_space<vmem>>, vector<8x256xbf16>,
    return
  }
  func.func @transform_0(%arg0: i32) -> (i32, i32) {
    %c0_i32 = arith.constant 0 : i32
    %c0_i32_0 = arith.constant 0 : i32
    return %arg0, %c0_i32 : i32, i32
  }
  func.func @transform_1(%arg0: i32) -> (i32, i32) {
    %c0_i32 = arith.constant 0 : i32
    %c0_i32_0 = arith.constant 0 : i32
    %c0_i32_1 = arith.constant 0 : i32
    return %c0_i32, %c0_i32_0 : i32, i32
  }
  func.func @transform_2(%arg0: i32) -> (i32, i32) {
    %c0_i32 = arith.constant 0 : i32
    %c0_i32_0 = arith.constant 0 : i32
    %c0_i32_1 = arith.constant 0 : i32
    return %c0_i32, %c0_i32_0 : i32, i32
  }
  func.func @transform_3(%arg0: i32) -> (i32, i32) {
    %c0_i32 = arith.constant 0 : i32
    %c0_i32_0 = arith.constant 0 : i32
    %c0_i32_1 = arith.constant 0 : i32
    return %c0_i32, %c0_i32_0 : i32, i32
  }
  func.func @transform_4(%arg0: i32) -> (i32, i32) {
    %c0_i32 = arith.constant 0 : i32
    %c0_i32_0 = arith.constant 0 : i32
    %c0_i32_1 = arith.constant 0 : i32
    return %c0_i32, %c0_i32_0 : i32, i32
  }
  func.func @transform_5(%arg0: i32) -> (i32, i32) {
    %c0_i32 = arith.constant 0 : i32
    %c0_i32_0 = arith.constant 0 : i32
    %c0_i32_1 = arith.constant 0 : i32
    return %c0_i32, %c0_i32_0 : i32, i32
  }
  func.func @transform_6(%arg0: i32) -> (i32, i32) {
    %c0_i32 = arith.constant 0 : i32
    %c0_i32_0 = arith.constant 0 : i32
    %c0_i32_1 = arith.constant 0 : i32
    return %c0_i32, %c0_i32_0 : i32, i32
  }
  func.func @transform_7(%arg0: i32) -> (i32, i32) {
    %c0_i32 = arith.constant 0 : i32
    %c0_i32_0 = arith.constant 0 : i32
    %c0_i32_1 = arith.constant 0 : i32
    return %c0_i32, %c0_i32_0 : i32, i32
  }
  func.func @transform_8(%arg0: i32) -> (i32, i32) {
    %c0_i32 = arith.constant 0 : i32
    %c0_i32_0 = arith.constant 0 : i32
    %c0_i32_1 = arith.constant 0 : i32
    return %c0_i32, %c0_i32_0 : i32, i32
  }
  func.func @transform_9(%arg0: i32) -> (i32, i32) {
    %c0_i32 = arith.constant 0 : i32
    %c0_i32_0 = arith.constant 0 : i32
    %c0_i32_1 = arith.constant 0 : i32
    return %c0_i32, %c0_i32_0 : i32, i32
  }
  func.func @transform_10(%arg0: i32) -> (i32, i32) {
    %c0_i32 = arith.constant 0 : i32
    %c0_i32_0 = arith.constant 0 : i32
    %c0_i32_1 = arith.constant 0 : i32
    return %c0_i32, %c0_i32_0 : i32, i32
  }
  func.func @transform_11(%arg0: i32) -> (i32, i32) {
    %c0_i32 = arith.constant 0 : i32
    %c0_i32_0 = arith.constant 0 : i32
    %c0_i32_1 = arith.constant 0 : i32
    return %c0_i32, %c0_i32_0 : i32, i32
  }
  func.func @transform_12(%arg0: i32) -> (i32, i32) {
    %c0_i32 = arith.constant 0 : i32
    %c0_i32_0 = arith.constant 0 : i32
    %c0_i32_1 = arith.constant 0 : i32
    return %c0_i32, %c0_i32_0 : i32, i32
  }
  func.func @transform_13(%arg0: i32) -> (i32, i32) {
    %c0_i32 = arith.constant 0 : i32
    %c0_i32_0 = arith.constant 0 : i32
    return %arg0, %c0_i32 : i32, i32
  }
}

</mosaic_0001>

<bundles_post_ra>
// kernel: autoencoder_forward.1
= control target key start
LH: loop header
LB: loop body
LE: loop exit
PB: predicated region body
PF: predicated region fallthrough
CT: control target
= control target key end

     0   :  { %18 = vsyncpa [#allocation3], 0  ;;  %s1525_s0 = inlined_call_operand.hbm [shape: f32[8,256], index: 0, kind: input, shape index: {}]   ;;  %s1526_s1 = inlined_call_operand.hbm [shape: bf16[256,128], index: 1, kind: input, shape index: {}]   ;;  %s1527_s2 = inlined_call_operand.vmem [shape: f32[1,128], index: 2, kind: input, shape index: {}]   ;;  %s1528_s3 = inlined_call_operand.hbm [shape: bf16[128,128], index: 3, kind: input, shape index: {}]   ;;  %s1529_s4 = inlined_call_operand.hbm [shape: f32[1,128], index: 4, kind: input, shape index: {}]   ;;  %s1530_s5 = inlined_call_operand.hbm [shape: bf16[128,128], index: 5, kind: input, shape index: {}]   ;;  %s1531_s6 = inlined_call_operand.vmem [shape: f32[1,128], index: 6, kind: input, shape index: {}]   ;;  %s1532_s7 = inlined_call_operand.hbm [shape: bf16[128,128], index: 7, kind: input, shape index: {}]   ;;  %s1533_s8 = inlined_call_operand.vmem [shape: f32[1,128], index: 8, kind: input, shape index: {}]   ;;  %s1534_s9 = inlined_call_operand.hbm [shape: bf16[128,128], index: 9, kind: input, shape index: {}]   ;;  %s1535_s10 = inlined_call_operand.vmem [shape: f32[1,128], index: 10, kind: input, shape index: {}]   ;;  %s1536_s11 = inlined_call_operand.hbm [shape: bf16[128,256], index: 11, kind: input, shape index: {}]   ;;  %s1537_s12 = inlined_call_operand.vmem [shape: f32[1,256], index: 12, kind: input, shape index: {}]   ;;  %s1538_s13 = inlined_call_operand.hbm [shape: bf16[8,256], index: 13, kind: output, shape index: {}]  }
   0x1   :  { %19 = vsyncpa [#allocation6], 0 }
   0x2   :  { %20 = vsyncpa [#allocation9], 0 }
   0x3   :  { %21 = vsyncpa [#allocation12], 0 }
   0x4   :  { %22 = vsyncpa [#allocation15], 0  ;;  %s39_s27 = sshll.u32 %s1526_s1, 4  ;;  %s40_s27 = int_to_ptr.hbm [resolvable:$true] %s39_s27 }
   0x5   :  { %23 = vsyncpa [#allocation4], 0  ;;  %s1385_s28 = smov [#allocation5]   ;;  %s68_s15 = sshll.u32 %s1529_s4, 4  ;;  %s69_s15 = int_to_ptr.hbm [resolvable:$true] %s68_s15 }
   0x6   :  { %s41_s29 = sshll.u32 %s1385_s28, 4  ;;  %s1386_s16 = smov 64   ;;  %s42_s29 = int_to_ptr.vmem [resolvable:$true] %s41_s29 }
   0x7   :  { %s1387_s17 = smov 4   ;;  %s1388_s18 = smov [#allocation8]  }
   0x8   :  { %47 = dma.hbm_to_vmem [thread:$0]  %s40_s27, 2048, %s42_s29, [#allocation6], %s1386_s16, %s1386_s16, %s1387_s17  }
   0x9   :  { %s70_s19 = sshll.u32 %s1388_s18, 4  ;;  %s93_s21 = sshll.u32 %s1532_s7, 4  ;;  %s71_s19 = int_to_ptr.vmem [resolvable:$true] %s70_s19  ;;  %s94_s21 = int_to_ptr.hbm [resolvable:$true] %s93_s21 }
   0xa   :  { %73 = dma.hbm_to_vmem [thread:$0]  %s69_s15, 16, %s71_s19, [#allocation9]  }
   0xb   :  { %s29_s4 = sshll.u32 %s1525_s0, 4  ;;  %s1389_s24 = smov [#allocation11]   ;;  %s30_s4 = int_to_ptr.hbm [resolvable:$true] %s29_s4 }
   0xc   :  { %s95_s25 = sshll.u32 %s1389_s24, 4  ;;  %s1390_s26 = smov [#allocation2]   ;;  %s96_s25 = int_to_ptr.vmem [resolvable:$true] %s95_s25 }
   0xd   :  { %101 = dma.hbm_to_vmem [thread:$0]  %s94_s21, 1024, %s96_s25, [#allocation12], %s1386_s16, %s1386_s16, %s1387_s17  }
   0xe   :  { %s31_s27 = sshll.u32 %s1390_s26, 4  ;;  %s54_s7 = sshll.u32 %s1528_s3, 4  ;;  %s32_s27 = int_to_ptr.vmem [resolvable:$true] %s31_s27  ;;  %s55_s7 = int_to_ptr.hbm [resolvable:$true] %s54_s7 }
   0xf   :  { %34 = dma.hbm_to_vmem [thread:$0]  %s30_s4, 256, %s32_s27, [#allocation3]  }
  0x10   :  { %s78_s0 = sshll.u32 %s1530_s5, 4  ;;  %s1391_s15 = smov [#allocation7]   ;;  %s79_s0 = int_to_ptr.hbm [resolvable:$true] %s78_s0 }
  0x11   :  { %s56_s18 = sshll.u32 %s1391_s15, 4  ;;  %s1392_s19 = smov [#allocation10]   ;;  %s57_s18 = int_to_ptr.vmem [resolvable:$true] %s56_s18 }
  0x12   :  { %62 = dma.hbm_to_vmem [thread:$0]  %s55_s7, 1024, %s57_s18, [#allocation6], %s1386_s16, %s1386_s16, %s1387_s17  }
  0x13   :  { %s80_s20 = sshll.u32 %s1392_s19, 4  ;;  %s108_s3 = sshll.u32 %s1534_s9, 4  ;;  %s81_s20 = int_to_ptr.vmem [resolvable:$true] %s80_s20  ;;  %s109_s3 = int_to_ptr.hbm [resolvable:$true] %s108_s3 }
  0x14   :  { %86 = dma.hbm_to_vmem [thread:$0]  %s79_s0, 1024, %s81_s20, [#allocation9], %s1386_s16, %s1386_s16, %s1387_s17  }
  0x15   :  { %s123_s23 = sshll.u32 %s1536_s11, 4  ;;  %s1393_s4 = smov [#allocation13]   ;;  %s124_s23 = int_to_ptr.hbm [resolvable:$true] %s123_s23 }
  0x16   :  { %s110_s24 = sshll.u32 %s1393_s4, 4  ;;  %s1394_s25 = smov [#allocation14]   ;;  %s111_s24 = int_to_ptr.vmem [resolvable:$true] %s110_s24 }
  0x17   :  { %116 = dma.hbm_to_vmem [thread:$0]  %s109_s3, 1024, %s111_s24, [#allocation12], %s1386_s16, %s1386_s16, %s1387_s17  }
  0x18   :  { %s125_s9 = sshll.u32 %s1394_s25, 4  ;;  %s1395_s26 = smov 128   ;;  %s126_s9 = int_to_ptr.vmem [resolvable:$true] %s125_s9 }
  0x19   :  { %s1396_s27 = smov 8  }
  0x1a   :  { %131 = dma.hbm_to_vmem [thread:$0]  %s124_s23, 2048, %s126_s9, [#allocation15], %s1395_s26, %s1395_s26, %s1396_s27  }
  0x1b   :  { %1373 = dma.done.wait [#allocation3], 256  }
  0x1c   :  { %1374 = vsyncadd [#allocation3], 4294967040 }
  0x1d   :  { %1375 = dma.done.wait [#allocation6], 3072  }
  0x1e   :  { %1376 = vsyncadd [#allocation6], 4294964224 }
  0x1f   :  { %1377 = dma.done.wait [#allocation9], 1040  }
  0x20   :  { %1378 = vsyncadd [#allocation9], 4294966256 }
  0x21   :  { %1379 = dma.done.wait [#allocation12], 2048  }
  0x22   :  { %1380 = vsyncadd [#allocation12], 4294965248 }
  0x23   :  { %1381 = dma.done.wait [#allocation15], 2048  }
  0x24   :  { %1382 = vsyncadd [#allocation15], 4294965248  ;;  %v1078_v0 = vld [vmem:[#allocation5 + $0x38] sm:$0xff]  ;;  %v1077_v2 = vld [vmem:[#allocation5 + $0x30] sm:$0xff]  ;;  %s801_s18 = sshll.u32 %s1538_s13, 4  ;;  %s802_s18 = int_to_ptr.hbm [resolvable:$true] %s801_s18 }
  0x25   :  { %v1086_v1 = vld [vmem:[#allocation5 + $0x78] sm:$0xff]  ;;  %302 = vmatpush.bf16.msra.mxu0 %v1078_v0  ;;  %v1085_v3 = vld [vmem:[#allocation5 + $0x70] sm:$0xff]  ;;  %v1076_v4 = vld [vmem:[#allocation5 + $0x28] sm:$0xff] }
  0x26   :  { %315 = vmatpush.bf16.msra.mxu1 %v1086_v1  ;;  %v1084_v5 = vld [vmem:[#allocation5 + $0x68] sm:$0xff]  ;;  %v1094_v6 = vld [vmem:[#allocation7 + $0x38] sm:$0xff]  ;;  %v1093_v7 = vld [vmem:[#allocation7 + $0x30] sm:$0xff] }
  0x27   :  { %398 = vmatpush.bf16.msra.mxu2 %v1094_v6  ;;  %v1075_v8 = vld [vmem:[#allocation5 + $0x20] sm:$0xff]  ;;  %v1092_v10 = vld [vmem:[#allocation7 + $0x28] sm:$0xff]  ;;  %v1074_v11 = vld [vmem:[#allocation5 + $0x18] sm:$0xff] }
  0x28   :  { %v1083_v9 = vld [vmem:[#allocation5 + $0x60] sm:$0xff]  ;;  %v1082_v12 = vld [vmem:[#allocation5 + $0x58] sm:$0xff]  ;;  %v1073_v14 = vld [vmem:[#allocation5 + $0x10] sm:$0xff] }
  0x29   :  { %303 = vmatpush.bf16.msra.mxu0 %v1077_v2  ;;  %v1091_v13 = vld [vmem:[#allocation7 + $0x20] sm:$0xff]  ;;  %v1081_v15 = vld [vmem:[#allocation5 + $0x50] sm:$0xff]  ;;  %v1090_v16 = vld [vmem:[#allocation7 + $0x18] sm:$0xff] }
  0x2a   :  { %316 = vmatpush.bf16.msra.mxu1 %v1085_v3  ;;  %v1072_v17 = vld [vmem:[#allocation5 + $0x8] sm:$0xff]  ;;  %v1089_v19 = vld [vmem:[#allocation7 + $0x10] sm:$0xff]  ;;  %v1071_v20 = vld [vmem:[#allocation5] sm:$0xff] }
  0x2b   :  { %399 = vmatpush.bf16.msra.mxu2 %v1093_v7  ;;  %v1080_v18 = vld [vmem:[#allocation5 + $0x48] sm:$0xff]  ;;  %v1079_v21 = vld [vmem:[#allocation5 + $0x40] sm:$0xff]  ;;  %v166_v22 = vld [vmem:[#allocation2] sm:$0xff] }
  0x2c   :  { %v167_v23 = vld [vmem:[#allocation2 + $0x8] sm:$0xff]  ;;  %v168_v24 = vpack.c.bf16 %v166_v22, %v166_v22  ;;  %v1088_v26 = vld [vmem:[#allocation7 + $0x8] sm:$0xff]  ;;  %v1087_v27 = vld [vmem:[#allocation7] sm:$0xff] }
  0x2d   :  { %304 = vmatpush.bf16.msra.mxu0 %v1076_v4  ;;  %v169_v25 = vpack.c.bf16 %v167_v23, %v167_v23  ;;  %v1102_v28 = vld [vmem:[#allocation10 + $0x38] sm:$0xff]  ;;  %v1101_v29 = vld [vmem:[#allocation10 + $0x30] sm:$0xff]  ;;  %v1100_v30 = vld [vmem:[#allocation10 + $0x28] sm:$0xff] }
  0x2e   :  { %317 = vmatpush.bf16.msra.mxu1 %v1084_v5  ;;  %481 = vmatpush.bf16.msra.mxu3 %v1102_v28  ;;  %v1099_v31 = vld [vmem:[#allocation10 + $0x20] sm:$0xff]  ;;  %v1098_v32 = vld [vmem:[#allocation10 + $0x18] sm:$0xff]  ;;  %v1097_v33 = vld [vmem:[#allocation10 + $0x10] sm:$0xff] }
  0x2f   :  { %400 = vmatpush.bf16.msra.mxu2 %v1092_v10  ;;  %v1148_v34 = vld [vmem:[%s1527_s2] ss:$0 sm:$0xff]  ;;  %v1095_v44 = vld [vmem:[#allocation10] sm:$0xff]  ;;  %v1110_v45 = vld [vmem:[#allocation11 + $0x38] sm:$0xff] }
  0x30   :  { %v1096_v43 = vld [vmem:[#allocation10 + $0x8] sm:$0xff]  ;;  %v1109_v46 = vld [vmem:[#allocation11 + $0x30] sm:$0xff]  ;;  %v1107_v48 = vld [vmem:[#allocation11 + $0x20] sm:$0xff] }
  0x31   :  { %305 = vmatpush.bf16.msra.mxu0 %v1075_v8  ;;  %v1108_v47 = vld [vmem:[#allocation11 + $0x28] sm:$0xff]  ;;  %v1106_v49 = vld [vmem:[#allocation11 + $0x18] sm:$0xff]  ;;  %v1105_v50 = vld [vmem:[#allocation11 + $0x10] sm:$0xff] }
  0x32   :  { %318 = vmatpush.bf16.msra.mxu1 %v1083_v9  ;;  %482 = vmatpush.bf16.msra.mxu3 %v1101_v29  ;;  %v1149_v51 = vld [vmem:[#allocation8] ss:$0 sm:$0xff]  ;;  %v1104_v57 = vld [vmem:[#allocation11 + $0x8] sm:$0xff]  ;;  %v1103_v58 = vld [vmem:[#allocation11] sm:$0xff] }
  0x33   :  { %401 = vmatpush.bf16.msra.mxu2 %v1091_v13  ;;  %v1118_v59 = vld [vmem:[#allocation13 + $0x38] sm:$0xff]  ;;  %v1117_v60 = vld [vmem:[#allocation13 + $0x30] sm:$0xff]  ;;  %v1116_v61 = vld [vmem:[#allocation13 + $0x28] sm:$0xff] }
  0x34   :  { %v1115_v62 = vld [vmem:[#allocation13 + $0x20] sm:$0xff]  ;;  %v1114_v63 = vld [vmem:[#allocation13 + $0x18] sm:$0xff]  ;;  %v1113_v0 = vld [vmem:[#allocation13 + $0x10] sm:$0xff] }
  0x35   :  { %306 = vmatpush.bf16.msra.mxu0 %v1074_v11  ;;  %v1150_v1 = vld [vmem:[%s1531_s6] ss:$0 sm:$0xff]  ;;  %v1111_v8 = vld [vmem:[#allocation13] sm:$0xff]  ;;  %v1065_v9 = vld [vmem:[#allocation14 + $0x70] sm:$0xf] }
  0x36   :  { %319 = vmatpush.bf16.msra.mxu1 %v1082_v12  ;;  %483 = vmatpush.bf16.msra.mxu3 %v1100_v30  ;;  %v1112_v7 = vld [vmem:[#allocation13 + $0x8] sm:$0xff]  ;;  %v1134_v10 = vld [vmem:[#allocation14 + $0x74] sm:$0xf0]  ;;  %v1133_v11 = vld [vmem:[#allocation14 + $0x74] sm:$0xf] }
  0x37   :  { %402 = vmatpush.bf16.msra.mxu2 %v1090_v16  ;;  %v1066_v12 = vor.u32 %v1134_v10, %v1065_v9  ;;  %v1067_v13 = vld [vmem:[#allocation14 + $0x78] sm:$0xf0]  ;;  %v1130_v22 = vld [vmem:[#allocation14 + $0x54] sm:$0xf0]  ;;  %v1129_v23 = vld [vmem:[#allocation14 + $0x54] sm:$0xf] }
  0x38   :  { %v1070_v16 = vor.u32 %v1133_v11, %v1067_v13  ;;  %v1128_v28 = vld [vmem:[#allocation14 + $0x44] sm:$0xf0]  ;;  %v1127_v29 = vld [vmem:[#allocation14 + $0x44] sm:$0xf]  ;;  %v1043_v30 = vld [vmem:[#allocation14 + $0x48] sm:$0xf0] }
  0x39   :  { %307 = vmatpush.bf16.msra.mxu0 %v1073_v14  ;;  %v1057_v14 = vld [vmem:[#allocation14 + $0x60] sm:$0xf] }
  0x3a   :  { %320 = vmatpush.bf16.msra.mxu1 %v1081_v15  ;;  %484 = vmatpush.bf16.msra.mxu3 %v1099_v31  ;;  %v1132_v15 = vld [vmem:[#allocation14 + $0x64] sm:$0xf0] }
  0x3b   :  { %403 = vmatpush.bf16.msra.mxu2 %v1089_v19  ;;  %v1058_v19 = vor.u32 %v1132_v15, %v1057_v14 }
  0x3d   :  { %308 = vmatpush.bf16.msra.mxu0 %v1072_v17  ;;  %v1131_v17 = vld [vmem:[#allocation14 + $0x64] sm:$0xf] }
  0x3e   :  { %321 = vmatpush.bf16.msra.mxu1 %v1080_v18  ;;  %485 = vmatpush.bf16.msra.mxu3 %v1098_v32  ;;  %v1059_v18 = vld [vmem:[#allocation14 + $0x68] sm:$0xf0]  ;;  %v1046_v32 = vor.u32 %v1127_v29, %v1043_v30 }
  0x3f   :  { %404 = vmatpush.bf16.msra.mxu2 %v1088_v26 }
  0x41   :  { %309 = vmatpush.bf16.msra.mxu0 %v1071_v20  ;;  %v1062_v20 = vor.u32 %v1131_v17, %v1059_v18 }
  0x42   :  { %322 = vmatpush.bf16.msra.mxu1 %v1079_v21  ;;  %486 = vmatpush.bf16.msra.mxu3 %v1097_v33  ;;  %v1049_v21 = vld [vmem:[#allocation14 + $0x50] sm:$0xf] }
  0x43   :  { %405 = vmatpush.bf16.msra.mxu2 %v1087_v27  ;;  %v1041_v27 = vld [vmem:[#allocation14 + $0x40] sm:$0xf]  ;;  %v1033_v33 = vld [vmem:[#allocation14 + $0x30] sm:$0xf] }
  0x44   :  { %310 = vmatmul.bf16.vlgmr.msra.gmra.mxu0 %v168_v24  ;;  %v1051_v24 = vld [vmem:[#allocation14 + $0x58] sm:$0xf0]  ;;  %v1042_v31 = vor.u32 %v1128_v28, %v1041_v27 }
  0x45   :  { %323 = vmatmul.bf16.vlgmr.msra.gmra.mxu1 %v169_v25  ;;  %564 = vmatpush.bf16.msrb.mxu0 %v1110_v45  ;;  %v1050_v25 = vor.u32 %v1130_v22, %v1049_v21  ;;  %v1054_v26 = vor.u32 %v1129_v23, %v1051_v24  ;;  %v1151_v45 = vld [vmem:[%s1533_s8] ss:$0 sm:$0xff] }
  0x46   :  { %487 = vmatpush.bf16.msra.mxu3 %v1096_v43  ;;  %647 = vmatpush.bf16.msrb.mxu1 %v1118_v59  ;;  %v1119_v59 = vld [vmem:[#allocation14 + $0x4] sm:$0xf] }
  0x47   :  { %764 = vmatpush.bf16.msrb.mxu2 %v1066_v12 }
  0x49   :  { %565 = vmatpush.bf16.msrb.mxu0 %v1109_v46 }
  0x4a   :  { %488 = vmatpush.bf16.msra.mxu3 %v1095_v44  ;;  %648 = vmatpush.bf16.msrb.mxu1 %v1117_v60 }
  0x4b   :  { %765 = vmatpush.bf16.msrb.mxu2 %v1058_v19 }
  0x4d   :  { %566 = vmatpush.bf16.msrb.mxu0 %v1108_v47 }
  0x4e   :  { %649 = vmatpush.bf16.msrb.mxu1 %v1116_v61  ;;  %777 = vmatpush.bf16.msrb.mxu3 %v1070_v16  ;;  %v1011_v61 = vld [vmem:[#allocation14 + $0x8] sm:$0xf0] }
  0x4f   :  { %766 = vmatpush.bf16.msrb.mxu2 %v1050_v25 }
  0x51   :  { %567 = vmatpush.bf16.msrb.mxu0 %v1107_v48 }
  0x52   :  { %650 = vmatpush.bf16.msrb.mxu1 %v1115_v62  ;;  %778 = vmatpush.bf16.msrb.mxu3 %v1062_v20  ;;  %v1014_v62 = vor.u32 %v1119_v59, %v1011_v61 }
  0x53   :  { %767 = vmatpush.bf16.msrb.mxu2 %v1042_v31 }
  0x55   :  { %568 = vmatpush.bf16.msrb.mxu0 %v1106_v49 }
  0x56   :  { %651 = vmatpush.bf16.msrb.mxu1 %v1114_v63  ;;  %779 = vmatpush.bf16.msrb.mxu3 %v1054_v26  ;;  %v1152_v63 = vld [vmem:[%s1535_s10] ss:$0 sm:$0xff]  ;;  %s1397_s10 = smov [#allocation16]  }
  0x57   :  { %s799_s14 = sshll.u32 %s1397_s10, 4  ;;  %s800_s14 = int_to_ptr.vmem [resolvable:$true] %s799_s14 }
  0x59   :  { %569 = vmatpush.bf16.msrb.mxu0 %v1105_v50 }
  0x5a   :  { %652 = vmatpush.bf16.msrb.mxu1 %v1113_v0  ;;  %780 = vmatpush.bf16.msrb.mxu3 %v1046_v32 }
  0x5d   :  { %570 = vmatpush.bf16.msrb.mxu0 %v1104_v57  ;;  %v1009_v57 = vld [vmem:[#allocation14] sm:$0xf] }
  0x5e   :  { %653 = vmatpush.bf16.msrb.mxu1 %v1112_v7 }
  0x61   :  { %571 = vmatpush.bf16.msrb.mxu0 %v1103_v58  ;;  %v1120_v58 = vld [vmem:[#allocation14 + $0x4] sm:$0xf0] }
  0x62   :  { %654 = vmatpush.bf16.msrb.mxu1 %v1111_v8  ;;  %v1010_v60 = vor.u32 %v1120_v58, %v1009_v57 }
  0xc1   :  { %v311_v35 = vpop.f32.mrf.mxu0 }
  0xc2   :  { %v324_v36 = vpop.f32.mrf.mxu1  ;;  %v312_v37 = vadd.f32 %v1148_v34, %v311_v35  ;;  %v1126_v34 = vld [vmem:[#allocation14 + $0x34] sm:$0xf0]  ;;  %v1125_v35 = vld [vmem:[#allocation14 + $0x34] sm:$0xf] }
  0xc4   :  { %v325_v38 = vadd.f32 %v324_v36, %v312_v37  ;;  %v1035_v36 = vld [vmem:[#allocation14 + $0x38] sm:$0xf0]  ;;  %v1034_v37 = vor.u32 %v1126_v34, %v1033_v33 }
  0xc6   :  { %v328_v39 = vmax.f32 %v325_v38, 0.0  ;;  %v1038_v38 = vor.u32 %v1125_v35, %v1035_v36  ;;  %768 = vmatpush.bf16.msrb.mxu2 %v1034_v37 }
  0xc8   :  { %v329_v40 = vpack.c.bf16 %v328_v39, %v328_v39  ;;  %v1025_v39 = vld [vmem:[#allocation14 + $0x20] sm:$0xf]  ;;  %781 = vmatpush.bf16.msrb.mxu3 %v1038_v38 }
  0xc9   :  { %v313_v41 = vpop.f32.mrf.mxu0 }
  0xca   :  { %v326_v42 = vpop.f32.mrf.mxu1  ;;  %406 = vmatmul.bf16.vlgmr.msra.gmra.mxu2 %v329_v40  ;;  %v1124_v40 = vld [vmem:[#allocation14 + $0x24] sm:$0xf0]  ;;  %v1123_v41 = vld [vmem:[#allocation14 + $0x24] sm:$0xf] }
  0xcb   :  { %v1027_v42 = vld [vmem:[#allocation14 + $0x28] sm:$0xf0]  ;;  %v1026_v43 = vor.u32 %v1124_v40, %v1025_v39 }
  0xcc   :  { %v1030_v44 = vor.u32 %v1123_v41, %v1027_v42 }
  0xcd   :  { %769 = vmatpush.bf16.msrb.mxu2 %v1026_v43 }
  0xce   :  { %782 = vmatpush.bf16.msrb.mxu3 %v1030_v44 }
 0x14d   :  { %v407_v52 = vpop.f32.mrf.mxu2 }
 0x14e   :  { %v408_v53 = vadd.f32 %v1149_v51, %v407_v52  ;;  %v1017_v51 = vld [vmem:[#allocation14 + $0x10] sm:$0xf]  ;;  %v1122_v52 = vld [vmem:[#allocation14 + $0x14] sm:$0xf0] }
 0x150   :  { %v411_v54 = vmax.f32 %v408_v53, 0.0  ;;  %v1121_v53 = vld [vmem:[#allocation14 + $0x14] sm:$0xf] }
 0x152   :  { %v412_v55 = vpack.c.bf16 %v411_v54, %v411_v54  ;;  %v1018_v54 = vor.u32 %v1122_v52, %v1017_v51 }
 0x154   :  { %489 = vmatmul.bf16.vlgmr.msra.gmra.mxu3 %v412_v55  ;;  %v1019_v55 = vld [vmem:[#allocation14 + $0x18] sm:$0xf0]  ;;  %770 = vmatpush.bf16.msrb.mxu2 %v1018_v54 }
 0x155   :  { %v409_v56 = vpop.f32.mrf.mxu2 }
 0x156   :  { %v1022_v56 = vor.u32 %v1121_v53, %v1019_v55 }
 0x158   :  { %783 = vmatpush.bf16.msrb.mxu3 %v1022_v56  ;;  %771 = vmatpush.bf16.msrb.mxu2 %v1010_v60 }
 0x15c   :  { %784 = vmatpush.bf16.msrb.mxu3 %v1014_v62 }
 0x1d7   :  { %v490_v2 = vpop.f32.mrf.mxu3 }
 0x1d8   :  { %v491_v3 = vadd.f32 %v1150_v1, %v490_v2 }
 0x1da   :  { %v494_v4 = vmax.f32 %v491_v3, 0.0 }
 0x1dc   :  { %v495_v5 = vpack.c.bf16 %v494_v4, %v494_v4 }
 0x1de   :  { %572 = vmatmul.bf16.vlgmr.msrb.gmra.mxu0 %v495_v5  ;;  %v678_v5 = vld [vmem:[%s1537_s12] sm:$0x3] }
 0x1df   :  { %v492_v6 = vpop.f32.mrf.mxu3  ;;  %v681_v7 = vperm.slane %v678_v5, 1 }
 0x1e0   :  { %v680_v6 = vperm.slane %v678_v5, 0 }
 0x25b   :  { %v573_v46 = vpop.f32.mrf.mxu0 }
 0x25c   :  { %v574_v47 = vadd.f32 %v1151_v45, %v573_v46 }
 0x25e   :  { %v577_v48 = vmax.f32 %v574_v47, 0.0 }
 0x260   :  { %v578_v49 = vpack.c.bf16 %v577_v48, %v577_v48 }
 0x262   :  { %655 = vmatmul.bf16.vlgmr.msrb.gmra.mxu1 %v578_v49 }
 0x263   :  { %v575_v50 = vpop.f32.mrf.mxu0 }
 0x2df   :  { %v656_v0 = vpop.f32.mrf.mxu1 }
 0x2e0   :  { %v657_v1 = vadd.f32 %v1152_v63, %v656_v0 }
 0x2e2   :  { %v660_v2 = vmax.f32 %v657_v1, 0.0 }
 0x2e4   :  { %v661_v3 = vpack.c.bf16 %v660_v2, %v660_v2 }
 0x2e6   :  { %772 = vmatmul.bf16.vlgmr.msrb.gmra.mxu2 %v661_v3  ;;  %785 = vmatmul.bf16.vlgmr.msrb.gmra.mxu3 %v661_v3 }
 0x2e7   :  { %v658_v4 = vpop.f32.mrf.mxu1 }
 0x369   :  { %v773_v8 = vpop.f32.mrf.mxu2  ;;  %v786_v9 = vpop.f32.mrf.mxu3 }
 0x36a   :  { %v774_v10 = vadd.f32 %v773_v8, %v680_v6  ;;  %v787_v11 = vadd.f32 %v786_v9, %v681_v7 }
 0x36c   :  { %1153 = vtanh.f32 %v774_v10 }
 0x36d   :  { %1155 = vtanh.f32 %v787_v11 }
 0x371   :  { %v775_v12 = vpop.f32.mrf.mxu2  ;;  %v788_v13 = vpop.f32.mrf.mxu3 }
 0x372   :  { %v1154_v14 = vpop.eup %1153 }
 0x373   :  { %v1156_v15 = vpop.eup %1155 }
 0x374   :  { %v792_v16 = vpack.c.bf16 %v1156_v15, %v1154_v14 }
 0x376   :  { %793 = vst [vmem:[#allocation16] sm:$0xff] %v792_v16 }
 0x377   :  { %804 = dma.vmem_to_hbm [thread:$0]  %s800_s14, 128, %s802_s18, [#allocation4]  }
 0x378   :  { %1383 = dma.done.wait [#allocation4], 128  }
 0x379   :  { %1384 = vsyncadd [#allocation4], 4294967168 }
 0x37a   :  { %809 = vsyncpa [#allocation3], 1 }
 0x37b   :  { %810 = vsyncpa [#allocation6], 1 }
 0x37c   :  { %811 = vsyncpa [#allocation9], 1 }
 0x37d   :  { %812 = vsyncpa [#allocation12], 1 }
 0x37e   :  { %813 = vsyncpa [#allocation15], 1 }
 0x37f   :  { %814 = vsyncpa [#allocation4], 1 }

</bundles_post_ra>
